<compile_context>
chip_gen: v5e
topology: v5e:2x2
jax: 0.10.0
libtpu: 0.0.40
codegen_flags: <defaults>
</compile_context>

<pallas_src>
import jax
import jax.numpy as jnp
from jax.experimental import pallas as pl
from jax.experimental.pallas import tpu as pltpu


def _pick_tile(dim, candidates):
    """First candidate that evenly divides `dim`, else the full dim."""
    for c in candidates:
        if c <= dim and dim % c == 0:
            return c
    return dim


def _vmem_capacity_bytes():
    """Physical VMEM of the attached chip; conservative fallback if unknown."""
    try:
        info = pltpu.get_tpu_info()
        cap = getattr(info, "vmem_capacity_bytes", None)
        if cap:
            return int(cap)
    except Exception:
        pass
    return 64 * 2**20   # smallest (v7x-sized) assumption when unknown


def _vmem_need_bytes(tm, tk, in_dim, mm_itemsize, out_itemsize):
    """Rough double-buffered VMEM footprint for one grid step."""
    x_t = tm * in_dim * mm_itemsize          # x tile
    we_t = tk * in_dim * mm_itemsize         # W_enc tile
    wd_t = in_dim * tk * mm_itemsize         # W_dec tile
    b_t = (tk + in_dim) * 4                  # biases (f32)
    out_t = tm * in_dim * out_itemsize       # output tile
    acc = tm * in_dim * 4                    # f32 accumulator scratch
    return 2 * (x_t + we_t + wd_t + b_t + out_t) + acc


def sae_kernel(x_ref, we_ref, be_ref, wd_ref, bd_ref, o_ref, acc_ref):
    """One (batch-tile i, hidden-tile k) grid step.

    x_ref:   (tm, in_dim)   matmul dtype (bf16 by default)
    we_ref:  (tk, in_dim)   encoder weight slice, PyTorch (hid, in) layout
    be_ref:  (1, tk)        encoder bias slice, f32
    wd_ref:  (in_dim, tk)   decoder weight slice, PyTorch (in, hid) layout
    bd_ref:  (1, in_dim)    decoder bias, f32
    o_ref:   (tm, in_dim)   output tile
    acc_ref: (tm, in_dim)   f32 accumulator scratch
    """
    k = pl.program_id(1)

    @pl.when(k == 0)
    def _init():
        # Fold b_dec into the accumulator init (no separate epilogue add).
        acc_ref[...] = jnp.broadcast_to(bd_ref[...], acc_ref.shape)

    # Encoder slice: contract input_size dim of x with input_size dim of
    # W_enc (stored (hid, in)) -> (tm, tk); f32 accumulation on the MXU.
    pre = jax.lax.dot_general(
        x_ref[...], we_ref[...],
        dimension_numbers=(((1,), (1,)), ((), ())),
        preferred_element_type=jnp.float32)
    h = jax.nn.sigmoid(pre + be_ref[...])          # f32, EUP

    # Decoder partial sum: contract the hidden-tile dim of h with the hidden
    # dim of W_dec (stored (in, hid)) -> (tm, in_dim), accumulated in f32.
    acc_ref[...] += jax.lax.dot_general(
        h.astype(wd_ref.dtype), wd_ref[...],
        dimension_numbers=(((1,), (1,)), ((), ())),
        preferred_element_type=jnp.float32)

    @pl.when(k == pl.num_programs(1) - 1)
    def _finalize():
        o_ref[...] = acc_ref[...].astype(o_ref.dtype)


def sae_forward(x, w_enc, b_enc, w_dec, b_dec, *, tm=None, tk=None,
                matmul_dtype=jnp.bfloat16, vmem_limit_bytes=None):
    """x: [B, in], w_enc: [hid, in], b_enc: [hid], w_dec: [in, hid], b_dec: [in]."""
    B, in_dim = x.shape
    hid = w_enc.shape[0]
    assert w_enc.shape == (hid, in_dim)
    assert b_enc.shape == (hid,)
    assert w_dec.shape == (in_dim, hid)
    assert b_dec.shape == (in_dim,)

    out_dtype = x.dtype
    mm_dtype = jnp.dtype(matmul_dtype) if matmul_dtype is not None else jnp.dtype(x.dtype)

    # Cast once in the wrapper (hoisted out of the kernel hot path). Weights
    # keep their PyTorch storage layouts -- no transpose pass over HBM.
    xm = x.astype(mm_dtype)
    we = w_enc.astype(mm_dtype)
    wd = w_dec.astype(mm_dtype)
    be = jnp.reshape(b_enc, (1, hid)).astype(jnp.float32)
    bd = jnp.reshape(b_dec, (1, in_dim)).astype(jnp.float32)

    cap = _vmem_capacity_bytes()
    out_itemsize = jnp.dtype(out_dtype).itemsize

    # Batch tile: multiple of 8, as large as possible, but prefer >= 2 batch
    # tiles so the "parallel" batch axis can shard across v7x's two TCs.
    if tm is None:
        tm = _pick_tile(B, (256, 128, 64, 32, 16, 8))
        if B // tm < 2:
            for cand in (256, 128, 64, 32, 16, 8):
                if cand <= B // 2 and B % cand == 0:
                    tm = cand
                    break

    # Hidden/K tile: largest lane-dense candidate whose double-buffered tiles
    # plus the f32 accumulator fit comfortably in this chip's VMEM.
    if tk is None:
        budget = int(0.6 * cap)
        tk = _pick_tile(hid, (128,))
        for cand in (512, 256, 128):
            if cand <= hid and hid % cand == 0:
                if _vmem_need_bytes(tm, cand, in_dim, mm_dtype.itemsize,
                                    out_itemsize) <= budget:
                    tk = cand
                    break

    # TODO(synk): pad ragged B / hidden_size instead of hard-asserting.
    assert B % tm == 0 and hid % tk == 0, (B, tm, hid, tk)
    grid = (B // tm, hid // tk)

    if vmem_limit_bytes is None:
        need = _vmem_need_bytes(tm, tk, in_dim, mm_dtype.itemsize, out_itemsize)
        vmem_limit_bytes = int(min(cap, max(32 * 2**20, need + (4 << 20))))

    cost = pl.CostEstimate(
        flops=2 * B * in_dim * hid + 2 * B * hid * in_dim,   # encoder + decoder
        transcendentals=B * hid,                             # sigmoid
        bytes_accessed=int(xm.size * mm_dtype.itemsize
                           + we.size * mm_dtype.itemsize
                           + wd.size * mm_dtype.itemsize
                           + be.size * 4 + bd.size * 4
                           + B * in_dim * out_itemsize))

    grid_spec = pltpu.PrefetchScalarGridSpec(
        num_scalar_prefetch=0,
        grid=grid,
        in_specs=[
            pl.BlockSpec((tm, in_dim), lambda i, k: (i, 0)),   # x
            pl.BlockSpec((tk, in_dim), lambda i, k: (k, 0)),   # W_enc (hid, in)
            pl.BlockSpec((1, tk),      lambda i, k: (0, k)),   # b_enc
            pl.BlockSpec((in_dim, tk), lambda i, k: (0, k)),   # W_dec (in, hid)
            pl.BlockSpec((1, in_dim),  lambda i, k: (0, 0)),   # b_dec
        ],
        out_specs=pl.BlockSpec((tm, in_dim), lambda i, k: (i, 0)),
        scratch_shapes=[pltpu.VMEM((tm, in_dim), jnp.float32)],
    )

    return pl.pallas_call(
        sae_kernel,
        out_shape=jax.ShapeDtypeStruct((B, in_dim), out_dtype),
        grid_spec=grid_spec,
        compiler_params=pltpu.CompilerParams(
            dimension_semantics=("parallel", "arbitrary"),
            vmem_limit_bytes=vmem_limit_bytes),
        cost_estimate=cost,
    )(xm, we, be, wd, bd)


def sae_reference(x, w_enc, b_enc, w_dec, b_dec):
    hp = jax.lax.Precision.HIGHEST
    h = jax.nn.sigmoid(jnp.dot(x, w_enc.T, precision=hp) + b_enc[None, :])
    return jnp.dot(h, w_dec.T, precision=hp) + b_dec[None, :]


if __name__ == "__main__":
    # Small but tiling-exercising SAE: over-complete hidden layer.
    batch = 16
    input_size = 256
    hidden_size = 512

    key = jax.random.PRNGKey(0)
    kx, k1, k2, k3, k4 = jax.random.split(key, 5)

    x = jax.random.normal(kx, (batch, input_size), dtype=jnp.float32)

    # Deterministic init mimicking torch.nn.Linear (uniform in +-1/sqrt(fan_in)).
    bound_e = 1.0 / (input_size ** 0.5)
    bound_d = 1.0 / (hidden_size ** 0.5)
    w_enc = jax.random.uniform(k1, (hidden_size, input_size), jnp.float32,
                               -bound_e, bound_e)
    b_enc = jax.random.uniform(k2, (hidden_size,), jnp.float32, -bound_e, bound_e)
    w_dec = jax.random.uniform(k3, (input_size, hidden_size), jnp.float32,
                               -bound_d, bound_d)
    b_dec = jax.random.uniform(k4, (input_size,), jnp.float32, -bound_d, bound_d)

    # Explicit small tiles so the demo exercises the full (batch, hidden-K)
    # grid: grid = (2, 4) with f32 accumulation across the hidden axis.
    out = sae_forward(x, w_enc, b_enc, w_dec, b_dec, tm=8, tk=128)
    out = jax.block_until_ready(out)

    ref = sae_reference(x, w_enc, b_enc, w_dec, b_dec)
    assert out.shape == (batch, input_size)
    max_err = float(jnp.max(jnp.abs(out - ref)))
    assert jnp.allclose(out, ref, atol=2e-2, rtol=2e-2), (
        f"mismatch vs reference, max abs err = {max_err}")

    print("KERNEL_OK")
</pallas_src>

<mosaic_0001>
module attributes {stable_mosaic.version = 11 : i64} {
  func.func @sae_kernel(%arg0: i32, %arg1: i32, %arg2: memref<8x256xbf16, #tpu.memory_space<vmem>>, %arg3: memref<128x256xbf16, #tpu.memory_space<vmem>>, %arg4: memref<1x128xf32, #tpu.memory_space<vmem>>, %arg5: memref<256x128xbf16, #tpu.memory_space<vmem>>, %arg6: memref<1x256xf32, #tpu.memory_space<vmem>>, %arg7: memref<8x256xf32, #tpu.memory_space<vmem>>, %arg8: memref<8x256xf32, #tpu.memory_space<vmem>>) attributes {dimension_semantics = [#tpu.dimension_semantics<parallel>, #tpu.dimension_semantics<arbitrary>], iteration_bounds = array<i64: 2, 4>, scalar_prefetch = 0 : i64, scratch_operands = 1 : i64, tpu.core_type = #tpu.core_type<tc>, window_params = [{transform_indices = @transform_0, window_bounds = array<i64: 8, 256>}, {transform_indices = @transform_1, window_bounds = array<i64: 128, 256>}, {transform_indices = @transform_2, window_bounds = array<i64: 1, 128>}, {transform_indices = @transform_3, window_bounds = array<i64: 256, 128>}, {pipeline_mode = #tpu.pipeline_mode<synchronous>, transform_indices = @transform_4, window_bounds = array<i64: 1, 256>}, {transform_indices = @transform_5, window_bounds = array<i64: 8, 256>}]} {
    %c0_i32 = arith.constant 0 : i32
    %0 = arith.cmpi eq, %arg1, %c0_i32 : i32
    %1 = arith.extui %0 : i1 to i32
    %c0_i32_0 = arith.constant 0 : i32
    %2 = arith.cmpi ne, %1, %c0_i32_0 : i32
    scf.if %2 {
      %c0_15 = arith.constant 0 : index
      %c0_16 = arith.constant 0 : index
      %23 = vector.load %arg6[%c0_15, %c0_16] : memref<1x256xf32, #tpu.memory_space<vmem>>, vector<1x256xf32>
      %24 = vector.shape_cast %23 : vector<1x256xf32> to vector<1x256xf32>
      %25 = vector.broadcast %24 : vector<1x256xf32> to vector<8x256xf32>
      %c0_17 = arith.constant 0 : index
      %c0_18 = arith.constant 0 : index
      %26 = vector.load %arg8[%c0_17, %c0_18] : memref<8x256xf32, #tpu.memory_space<vmem>>, vector<8x256xf32>
      tpu.vector_store %arg8[%c0_17, %c0_18], %25 {strides = array<i32>} : memref<8x256xf32, #tpu.memory_space<vmem>>, vector<8x256xf32>,
    } else {
    }
    %c0 = arith.constant 0 : index
    %c0_1 = arith.constant 0 : index
    %3 = vector.load %arg2[%c0, %c0_1] : memref<8x256xbf16, #tpu.memory_space<vmem>>, vector<8x256xbf16>
    %c0_2 = arith.constant 0 : index
    %c0_3 = arith.constant 0 : index
    %4 = vector.load %arg3[%c0_2, %c0_3] : memref<128x256xbf16, #tpu.memory_space<vmem>>, vector<128x256xbf16>
    %cst = arith.constant dense<0.000000e+00> : vector<8x128xf32>
    %5 = tpu.matmul %3, %4, %cst {dimension_numbers = #tpu.dot_dimension_numbers<[1], [1], [0], [0], [0, 0, 1, 0], [], []>} : vector<8x256xbf16>, vector<128x256xbf16>, vector<8x128xf32> -> vector<8x128xf32>
    %c0_4 = arith.constant 0 : index
    %c0_5 = arith.constant 0 : index
    %6 = vector.load %arg4[%c0_4, %c0_5] : memref<1x128xf32, #tpu.memory_space<vmem>>, vector<1x128xf32>
    %7 = vector.broadcast %6 : vector<1x128xf32> to vector<8x128xf32>
    %8 = arith.addf %5, %7 : vector<8x128xf32>
    %9 = arith.negf %8 : vector<8x128xf32>
    %10 = math.exp %9 : vector<8x128xf32>
    %cst_6 = arith.constant 1.000000e+00 : f32
    %11 = vector.broadcast %cst_6 : f32 to vector<8x128xf32>
    %12 = arith.addf %11, %10 : vector<8x128xf32>
    %13 = arith.divf %11, %12 : vector<8x128xf32>
    %c0_7 = arith.constant 0 : index
    %c0_8 = arith.constant 0 : index
    %14 = vector.load %arg8[%c0_7, %c0_8] : memref<8x256xf32, #tpu.memory_space<vmem>>, vector<8x256xf32>
    %15 = arith.truncf %13 : vector<8x128xf32> to vector<8x128xbf16>
    %c0_9 = arith.constant 0 : index
    %c0_10 = arith.constant 0 : index
    %16 = vector.load %arg5[%c0_9, %c0_10] : memref<256x128xbf16, #tpu.memory_space<vmem>>, vector<256x128xbf16>
    %cst_11 = arith.constant dense<0.000000e+00> : vector<8x256xf32>
    %17 = tpu.matmul %15, %16, %cst_11 {dimension_numbers = #tpu.dot_dimension_numbers<[1], [1], [0], [0], [0, 0, 1, 0], [], []>} : vector<8x128xbf16>, vector<256x128xbf16>, vector<8x256xf32> -> vector<8x256xf32>
    %18 = arith.addf %14, %17 : vector<8x256xf32>
    %c0_12 = arith.constant 0 : index
    %c0_13 = arith.constant 0 : index
    %19 = vector.load %arg8[%c0_12, %c0_13] : memref<8x256xf32, #tpu.memory_space<vmem>>, vector<8x256xf32>
    tpu.vector_store %arg8[%c0_12, %c0_13], %18 {strides = array<i32>} : memref<8x256xf32, #tpu.memory_space<vmem>>, vector<8x256xf32>,
    %c3_i32 = arith.constant 3 : i32
    %20 = arith.cmpi eq, %arg1, %c3_i32 : i32
    %21 = arith.extui %20 : i1 to i32
    %c0_i32_14 = arith.constant 0 : i32
    %22 = arith.cmpi ne, %21, %c0_i32_14 : i32
    scf.if %22 {
      %c0_15 = arith.constant 0 : index
      %c0_16 = arith.constant 0 : index
      %23 = vector.load %arg8[%c0_15, %c0_16] : memref<8x256xf32, #tpu.memory_space<vmem>>, vector<8x256xf32>
      %c0_17 = arith.constant 0 : index
      %c0_18 = arith.constant 0 : index
      %24 = vector.load %arg7[%c0_17, %c0_18] : memref<8x256xf32, #tpu.memory_space<vmem>>, vector<8x256xf32>
      tpu.vector_store %arg7[%c0_17, %c0_18], %23 {strides = array<i32>} : memref<8x256xf32, #tpu.memory_space<vmem>>, vector<8x256xf32>,
    } else {
    }
    return
  }
  func.func @transform_0(%arg0: i32, %arg1: i32) -> (i32, i32) {
    %c0_i32 = arith.constant 0 : i32
    %c0_i32_0 = arith.constant 0 : i32
    return %arg0, %c0_i32 : i32, i32
  }
  func.func @transform_1(%arg0: i32, %arg1: i32) -> (i32, i32) {
    %c0_i32 = arith.constant 0 : i32
    %c0_i32_0 = arith.constant 0 : i32
    return %arg1, %c0_i32 : i32, i32
  }
  func.func @transform_2(%arg0: i32, %arg1: i32) -> (i32, i32) {
    %c0_i32 = arith.constant 0 : i32
    %c0_i32_0 = arith.constant 0 : i32
    return %c0_i32, %arg1 : i32, i32
  }
  func.func @transform_3(%arg0: i32, %arg1: i32) -> (i32, i32) {
    %c0_i32 = arith.constant 0 : i32
    %c0_i32_0 = arith.constant 0 : i32
    return %c0_i32, %arg1 : i32, i32
  }
  func.func @transform_4(%arg0: i32, %arg1: i32) -> (i32, i32) {
    %c0_i32 = arith.constant 0 : i32
    %c0_i32_0 = arith.constant 0 : i32
    %c0_i32_1 = arith.constant 0 : i32
    return %c0_i32, %c0_i32_0 : i32, i32
  }
  func.func @transform_5(%arg0: i32, %arg1: i32) -> (i32, i32) {
    %c0_i32 = arith.constant 0 : i32
    %c0_i32_0 = arith.constant 0 : i32
    return %arg0, %c0_i32 : i32, i32
  }
}

</mosaic_0001>

<bundles_post_ra>
// kernel: tpu_custom_call.1
= control target key start
LH: loop header
LB: loop body
LE: loop exit
PB: predicated region body
PF: predicated region fallthrough
CT: control target
= control target key end

     0   :  { %s1797_s0 = inlined_call_operand.hbm [shape: bf16[16,256], index: 0, kind: input, shape index: {}]   ;;  %s1798_s1 = inlined_call_operand.hbm [shape: bf16[512,256], index: 1, kind: input, shape index: {}]   ;;  %s1799_s2 = inlined_call_operand.hbm [shape: f32[1,512], index: 2, kind: input, shape index: {}]   ;;  %s1800_s3 = inlined_call_operand.hbm [shape: bf16[256,512], index: 3, kind: input, shape index: {}]   ;;  %s1801_s4 = inlined_call_operand.vmem [shape: f32[1,256], index: 4, kind: input, shape index: {}]   ;;  %s1802_s5 = inlined_call_operand.hbm [shape: f32[16,256], index: 5, kind: output, shape index: {}]  }
   0x1   :  { %1811 = sst [smem:[#allocation26_spill]] %s1797_s0 }
   0x2   :  { %1812 = sst [smem:[#allocation27_spill]] %s1798_s1 }
   0x3   :  { %1813 = sst [smem:[#allocation28_spill]] %s1799_s2 }
   0x4   :  { %1814 = sst [smem:[#allocation29_spill]] %s1801_s4 }
   0x5   :  { %1815 = sst [smem:[#allocation30_spill]] %s1802_s5 }
   0x6   :  { %10 = vsyncpa [#allocation4], 0 }
   0x7   :  { %12 = vsyncpa [#allocation4 + $0x1], 0 }
   0x8   :  { %13 = vsyncpa [#allocation7], 0 }
   0x9   :  { %15 = vsyncpa [#allocation7 + $0x1], 0 }
   0xa   :  { %16 = vsyncpa [#allocation10], 0 }
   0xb   :  { %18 = vsyncpa [#allocation10 + $0x1], 0 }
   0xc   :  { %19 = vsyncpa [#allocation5], 0 }
   0xd   :  { %21 = vsyncpa [#allocation5 + $0x1], 0  ;;  %s1470_s18 = smov 0   ;;  %s1472_s19 = smov 0  }
   0xe   :  { %s1474_s20 = smov 0   ;;  %s1476_s21 = smov 0  }
   0xf   :  { %s1478_s22 = smov 0   ;;  %s1480_s23 = smov 0  }
  0x10   :  { %s1482_s24 = smov 0   ;;  %s1484_s25 = smov 0  }
  0x11   :  { %s1486_s26 = smov 0   ;;  %s1488_s27 = smov 0  }
  0x12   :  { %s1490_s28 = smov 0  }
  0x13 LB: > { %1816 = sst [smem:[#allocation16_spill]] %s1401_s20  ;;  %p54_p0 = scmp.eq.s32.totalorder %s1433_s28, 0  ;;  %s1433_s28 = sphi %s1490_s28, %s27_s28   ;;  %s1429_s27 = sphi %s1488_s27, %s1851_s27   ;;  %s1425_s26 = sphi %s1486_s26, %s1858_s26   ;;  %s1421_s25 = sphi %s1484_s25, %s1857_s25   ;;  %s1417_s24 = sphi %s1482_s24, %s1856_s24   ;;  %s1413_s23 = sphi %s1480_s23, %s1848_s23   ;;  %s1409_s22 = sphi %s1478_s22, %s1855_s22   ;;  %s1405_s21 = sphi %s1476_s21, %s1854_s21   ;;  %s1401_s20 = sphi %s1474_s20, %s1846_s20   ;;  %s1397_s19 = sphi %s1472_s19, %s1853_s19   ;;  %s1393_s18 = sphi %s1470_s18, %s1852_s18  }
  0x14   : > { %1817 = sst [smem:[#allocation17_spill]] %s1413_s23  ;;  %p79_p1 = scmp.ne.s32.totalorder %s1401_s20, %s1397_s19 }
  0x15   : > { %1818 = sst [smem:[#allocation18_spill]] %s1417_s24  ;;  %p1805_p2 = scmp.lt.s32.totalorder %s1433_s28, 8 }
  0x16   : > { %1819 = sst [smem:[#allocation19_spill]] %s1421_s25  ;;  %s231_s30 = sand.u32 1, %s1433_s28  }
  0x17   : > { %1820 = sst [smem:[#allocation20_spill]] %s1429_s27  ;;  %p81_p3 = por %p79_p1, %p54_p0 }
  0x18   : > { %s1534_s6 = sand.u32 1, %s1401_s20   ;;  %s1022_s7 = sshll.u32 %s1425_s26, 7 }
  0x19   : > { %s873_s8 = sshll.u32 %s1534_s6, 7  ;;  %s1821_s1 = sld [smem:[#allocation27_spill]] }
  0x1a   : > { %s235_s13 = scalar_lea.vmem [#allocation6], %s873_s8  ;;  %p1543_p4 = pnand %p1805_p2, %p81_p3 }
  0x1b   : > { %s244_s14 = sshll.u32 %s235_s13, 4  ;;  %s1547_s16 = scalar_lea.sflag [#allocation7], %s231_s30  ;;  %s245_s14 = int_to_ptr.vmem [resolvable:$true] %s244_s14 }
  0x1c   : > { %s1435_s17 = smov 128   ;;  %s275_s9 = scalar_lea.vmem [#allocation9], %s873_s8 }
  0x1d   : > { %s282_s10 = sshll.u32 %s275_s9, 4  ;;  %p879_p5 = scmp.ge.s32.totalorder %s1433_s28, 1  ;;  %s1553_s10 = int_to_ptr.vmem [resolvable:$true] %s282_s10 }
  0x1e   : > { %p290_p6 = scmp.lt.s32.totalorder %s1433_s28, 9  ;;  %s867_s8 = sadd.s32 4294967294, %s1433_s28  }
  0x1f   : > { %s241_s11 = scalar_lea.hbm %s1821_s1, %s1022_s7  ;;  %s1436_s7 = smov 8  }
  0x20   : > { %s242_s12 = sshll.u32 %s241_s11, 4  ;;  %p1556_p7 = pnand %p879_p5, %p290_p6  ;;  %s243_s12 = int_to_ptr.hbm [resolvable:$true] %s242_s12 }
  0x21   : > { %1072 = dma.hbm_to_vmem [thread:$0]  (!%p1543_p4), %s243_s12, 2048, %s245_s14, %s1547_s16, %s1435_s17, %s1435_s17, %s1436_s7  }
  0x22   : > { %s1561_s11 = sadd.s32 4294967295, %s1433_s28   ;;  %s36_s12 = sadd.s32 1, %s1425_s26 }
  0x23   : > { %p37_p8 = scmp.ge.s32.totalorder %s36_s12, 4  ;;  %s39_s13 = sadd.s32 1, %s1429_s27 }
  0x24   : > { %s46_s14 = sadd.s32 1, %s1413_s23  ;;  %p53_p9 = scmp.ne.s32.totalorder %s1413_s23, %s1409_s22 }
  0x25   : > { %s1860_s12 = smov (%p37_p8, %s36_s12), 0  ;;  %s1862_s13 = smov (!%p37_p8, %s39_s13), %s1429_s27 }
  0x26   : > { %1824 = sst [smem:[#allocation21_spill]] %s1860_s12  ;;  %p1577_p10 = por %p54_p0, %p53_p9 }
  0x27   : > { %p59_p11 = scmp.ne.s32.totalorder %s1409_s22, %s1405_s21  ;;  %p41_p12 = scmp.ge.s32.totalorder %s1862_s13, 2 }
  0x28   : > { %p60_p13 = scmp.eq.s32.totalorder %s1561_s11, 0  ;;  %s69_s7 = ssub.s32 %s1425_s26, %s1860_s12 }
  0x29   : > { %p85_p1 = scmp.ne.s32.totalorder %s1397_s19, %s1393_s18  ;;  %s1864_s13 = smov (%p41_p12, %s1862_s13), 0 }
  0x2a   : > { %1826 = sst [smem:[#allocation22_spill]] %s1864_s13  ;;  %p1593_p3 = por %p60_p13, %p59_p11 }
  0x2b   : > { %p70_p0 = scmp.eq.s32.totalorder %s69_s7, 0  ;;  %s43_s29 = ssub.s32 %s1429_s27, %s1864_s13 }
  0x2c   : > { %p1599_p5 = por %p85_p1, %p60_p13  ;;  %p44_p6 = scmp.eq.s32.totalorder %s43_s29, 0 }
  0x2d   : > { %p182_p8 = scmp.eq.s32.totalorder %s1561_s11, 7  ;;  %s1829_s12 = sadd.s32 1, %s1401_s20 }
  0x2e   : > { %s1607_s18 = scalar_select %p70_p0, %s1401_s20, %s1829_s12  }
  0x2f   : > { %s1610_s5 = scalar_select %p44_p6, %s1413_s23, %s46_s14  }
  0x30   : > { %1830 = sst [smem:[#allocation23_spill]] %s1607_s18  ;;  %p1615_p12 = por %p182_p8, %p53_p9 }
  0x31   : > { %1831 = sst [smem:[#allocation24_spill]] %s1610_s5  ;;  %p188_p2 = scmp.eq.s32.totalorder %s867_s8, 7 }
  0x32   : > { %s211_s7 = sand.u32 1, %s1413_s23   ;;  %s1020_s13 = sshll.u32 %s1429_s27, 3 }
  0x33   : > { %p1624_p13 = por %p188_p2, %p59_p11  ;;  %s870_s4 = sshll.u32 %s211_s7, 3 }
  0x34   : > { %s1835_s0 = sld [smem:[#allocation26_spill]]  ;;  %s215_s18 = scalar_lea.vmem [#allocation3], %s870_s4 }
  0x35   : > { %s1833_s29 = scalar_select %p1624_p13, 1, 0 }
  0x36   : > { %s224_s8 = sshll.u32 %s215_s18, 4  ;;  %p1836_p9 = scmp.lt.s32.totalorder %s1433_s28, 8  ;;  %s225_s8 = int_to_ptr.vmem [resolvable:$true] %s224_s8 }
  0x37   : > { %1834 = sst [smem:[#allocation25_spill]] %s1833_s29  ;;  %s212_s24 = scalar_lea.sflag [#allocation4], %s211_s7 }
  0x38   : > { %p1067_p2 = pnand %p1836_p9, %p1577_p10  ;;  %s1837_s2 = sld [smem:[#allocation28_spill]] }
  0x39   : > { %s878_s4 = sshll.u32 %s1425_s26, 2  ;;  %s272_s23 = scalar_lea.sflag [#allocation10], %s1534_s6 }
  0x3a   : > { %s220_s14 = scalar_lea.hbm %s1835_s0, %s1020_s13  ;;  %s257_s13 = scalar_lea.vmem [#allocation8], %s1534_s6 }
  0x3b   : > { %s222_s5 = sshll.u32 %s220_s14, 4  ;;  %s264_s12 = sshll.u32 %s257_s13, 4  ;;  %s223_s5 = int_to_ptr.hbm [resolvable:$true] %s222_s5  ;;  %s265_s12 = int_to_ptr.vmem [resolvable:$true] %s264_s12 }
  0x3c   : > { %1069 = dma.hbm_to_vmem [thread:$0]  (!%p1067_p2), %s223_s5, 128, %s225_s8, %s212_s24  }
  0x3d   : > { %s279_s14 = scalar_lea.hbm %s1800_s3, %s878_s4  ;;  %s1437_s27 = smov 256  }
  0x3e   : > { %s260_s20 = scalar_lea.hbm %s1837_s2, %s1425_s26  ;;  %s280_s0 = sshll.u32 %s279_s14, 4  ;;  %s281_s0 = int_to_ptr.hbm [resolvable:$true] %s280_s0 }
  0x3f   : > { %s262_s29 = sshll.u32 %s260_s20, 4  ;;  %s1438_s20 = smov 64   ;;  %s263_s29 = int_to_ptr.hbm [resolvable:$true] %s262_s29 }
  0x40   : > { %1075 = dma.hbm_to_vmem [thread:$0]  (!%p1543_p4), %s263_s29, 16, %s265_s12, %s1547_s16  }
  0x41   : > { %s1439_s2 = smov 4   ;;  %294 = sbr.rel (%p1556_p7) target bundleno = 487 (0x1e7), region = 40 }
  0x42   : > { %1078 = dma.hbm_to_vmem [thread:$0]  (!%p1543_p4), %s281_s0, 2048, %s1553_s10, %s272_s23, %s1437_s27, %s1438_s20, %s1439_s2  }
  0x43   : > { %s1654_s5 = sand.u32 (!%p1556_p7), 1, %s1409_s22  }
  0x44   : > { %s880_s16 = sshll.u32 (!%p1556_p7), %s1654_s5, 3  ;;  %s297_s7 = scalar_lea.sflag (!%p1556_p7), [#allocation4], %s1654_s5 }
  0x45   : > { %s1658_s29 = scalar_lea.vmem (!%p1556_p7), [#allocation3], %s880_s16 }
  0x46   : > { %1376 = dma.done.wait (%p1593_p3), %s297_s7, 128  }
  0x47   : > { %1378 = vsyncadd (%p1593_p3), %s297_s7, 4294967168  ;;  %s306_s0 = sand.u32 1, %s1561_s11   ;;  %s1666_s2 = sand.u32 1, %s1397_s19  }
  0x48   : > { %s881_s6 = sshll.u32 %s1666_s2, 7  ;;  %s307_s15 = scalar_lea.sflag [#allocation7], %s306_s0 }
  0x49   : > { %s1669_s10 = scalar_lea.vmem [#allocation6], %s881_s6 }
  0x4a   : > { %1380 = dma.done.wait (%p1599_p5), %s307_s15, 2064  }
  0x4b   : > { %1382 = vsyncadd (%p1599_p5), %s307_s15, 4294965232  ;;  %s319_s30 = scalar_lea.vmem [#allocation8], %s1666_s2  ;;  %s326_s9 = scalar_lea.sflag [#allocation10], %s1666_s2 }
  0x4c   : > { %s1677_s8 = scalar_lea.vmem [#allocation9], %s881_s6 }
  0x4d   : > { %1384 = dma.done.wait (%p1599_p5), %s326_s9, 2048  }
  0x4e   : > { %1386 = vsyncadd (%p1599_p5), %s326_s9, 4294965248  ;;  %s883_s11 = sshll.u32 %s1654_s5, 4  ;;  %s1838_s13 = sld [smem:[#allocation18_spill]] }
  0x4f   : > { %s1684_s24 = scalar_lea.vmem [#allocation11], %s883_s11 }
  0x54   : > { %p884_p4 = scmp.ne.s32.totalorder %s1838_s13, 0 }
  0x55   : > { %s1839_s18 = sld [smem:[#allocation29_spill]] (!%p884_p4) }
  0x56   : > { %375 = sbr.rel (%p884_p4) target bundleno = 96 (0x60), region = 60 }
  0x5b   : > { %v376_v0 = vld [vmem:[%s1839_s18] sm:$0x3] }
  0x5c   : > { %v378_v1 = vperm.slane %v376_v0, 0  ;;  %v379_v2 = vperm.slane %v376_v0, 1 }
  0x5e   : > { %382 = vst [vmem:[#allocation2] sm:$0xff] %v378_v1 }
  0x5f   : > { %383 = vst [vmem:[#allocation2 + $0x8] sm:$0xff] %v379_v2 }
  0x60 PF: > { %v943_v3 = vld [vmem:[%s1669_s10 + $0x70] sm:$0xf]  ;;  %v1038_v4 = vld [vmem:[%s1669_s10 + $0x74] sm:$0xf0]  ;;  %v1037_v5 = vld [vmem:[%s1669_s10 + $0x74] sm:$0xf] }
  0x61   : > { %v944_v6 = vor.u32 %v1038_v4, %v943_v3  ;;  %v945_v7 = vld [vmem:[%s1669_s10 + $0x78] sm:$0xf0]  ;;  %v935_v9 = vld [vmem:[%s1669_s10 + $0x60] sm:$0xf]  ;;  %v1036_v10 = vld [vmem:[%s1669_s10 + $0x64] sm:$0xf0] }
  0x62   : > { %v948_v8 = vor.u32 %v1037_v5, %v945_v7  ;;  %v1035_v11 = vld [vmem:[%s1669_s10 + $0x64] sm:$0xf]  ;;  %v937_v12 = vld [vmem:[%s1669_s10 + $0x68] sm:$0xf0]  ;;  %v936_v13 = vor.u32 %v1036_v10, %v935_v9  ;;  %v927_v15 = vld [vmem:[%s1669_s10 + $0x50] sm:$0xf] }
  0x63   : > { %492 = vmatpush.bf16.xpose.msra.mxu0 %v944_v6  ;;  %v940_v14 = vor.u32 %v1035_v11, %v937_v12  ;;  %v1034_v16 = vld [vmem:[%s1669_s10 + $0x54] sm:$0xf0]  ;;  %v1033_v17 = vld [vmem:[%s1669_s10 + $0x54] sm:$0xf]  ;;  %v929_v18 = vld [vmem:[%s1669_s10 + $0x58] sm:$0xf0] }
  0x64   : > { %505 = vmatpush.bf16.xpose.msra.mxu1 %v948_v8  ;;  %v928_v19 = vor.u32 %v1034_v16, %v927_v15  ;;  %v932_v20 = vor.u32 %v1033_v17, %v929_v18  ;;  %v919_v21 = vld [vmem:[%s1669_s10 + $0x40] sm:$0xf]  ;;  %v1032_v22 = vld [vmem:[%s1669_s10 + $0x44] sm:$0xf0]  ;;  %v1031_v23 = vld [vmem:[%s1669_s10 + $0x44] sm:$0xf] }
  0x65   : > { %v921_v24 = vld [vmem:[%s1669_s10 + $0x48] sm:$0xf0]  ;;  %v920_v25 = vor.u32 %v1032_v22, %v919_v21  ;;  %v911_v27 = vld [vmem:[%s1669_s10 + $0x30] sm:$0xf]  ;;  %v1030_v28 = vld [vmem:[%s1669_s10 + $0x34] sm:$0xf0] }
  0x66   : > { %v924_v26 = vor.u32 %v1031_v23, %v921_v24  ;;  %v1029_v29 = vld [vmem:[%s1669_s10 + $0x34] sm:$0xf]  ;;  %v913_v30 = vld [vmem:[%s1669_s10 + $0x38] sm:$0xf0]  ;;  %v912_v31 = vor.u32 %v1030_v28, %v911_v27  ;;  %v903_v35 = vld [vmem:[%s1669_s10 + $0x20] sm:$0xf] }
  0x67   : > { %v916_v32 = vor.u32 %v1029_v29, %v913_v30  ;;  %v1046_v33 = vld [vmem:[%s1677_s8 + $0x38] sm:$0xff]  ;;  %v1028_v36 = vld [vmem:[%s1669_s10 + $0x24] sm:$0xf0]  ;;  %v1027_v37 = vld [vmem:[%s1669_s10 + $0x24] sm:$0xf]  ;;  %s1840_s1 = sld [smem:[#allocation18_spill]] }
  0x68   : > { %v1054_v34 = vld [vmem:[%s1677_s8 + $0x78] sm:$0xff]  ;;  %v905_v38 = vld [vmem:[%s1669_s10 + $0x28] sm:$0xf0]  ;;  %668 = vmatpush.bf16.xpose.msra.mxu2 %v1046_v33  ;;  %v904_v39 = vor.u32 %v1028_v36, %v903_v35  ;;  %v1045_v41 = vld [vmem:[%s1677_s8 + $0x30] sm:$0xff] }
  0x69   : > { %681 = vmatpush.bf16.xpose.msra.mxu3 %v1054_v34  ;;  %v908_v40 = vor.u32 %v1027_v37, %v905_v38  ;;  %v1053_v42 = vld [vmem:[%s1677_s8 + $0x70] sm:$0xff]  ;;  %v897_v46 = vld [vmem:[%s1669_s10 + $0x18] sm:$0xf0]  ;;  %v1044_v49 = vld [vmem:[%s1677_s8 + $0x28] sm:$0xff] }
  0x6a   : > { %v895_v43 = vld [vmem:[%s1669_s10 + $0x10] sm:$0xf]  ;;  %v1026_v44 = vld [vmem:[%s1669_s10 + $0x14] sm:$0xf0]  ;;  %v1025_v45 = vld [vmem:[%s1669_s10 + $0x14] sm:$0xf] }
  0x6b   : > { %493 = vmatpush.bf16.xpose.msra.mxu0 %v936_v13  ;;  %v896_v47 = vor.u32 %v1026_v44, %v895_v43  ;;  %v900_v48 = vor.u32 %v1025_v45, %v897_v46  ;;  %v1052_v50 = vld [vmem:[%s1677_s8 + $0x68] sm:$0xff]  ;;  %v887_v51 = vld [vmem:[%s1669_s10] sm:$0xf]  ;;  %v1023_v53 = vld [vmem:[%s1669_s10 + $0x4] sm:$0xf] }
  0x6c   : > { %506 = vmatpush.bf16.xpose.msra.mxu1 %v940_v14  ;;  %v1024_v52 = vld [vmem:[%s1669_s10 + $0x4] sm:$0xf0]  ;;  %v889_v54 = vld [vmem:[%s1669_s10 + $0x8] sm:$0xf0]  ;;  %v384_v56 = vld [vmem:[%s1658_s29] sm:$0xff] }
  0x6d   : > { %v888_v55 = vor.u32 %v1024_v52, %v887_v51  ;;  %v892_v57 = vor.u32 %v1023_v53, %v889_v54  ;;  %v1043_v58 = vld [vmem:[%s1677_s8 + $0x20] sm:$0xff]  ;;  %v406_v60 = vunpack.c.l.b16 %v384_v56  ;;  %v407_v61 = vunpack.c.h.b16 %v384_v56  ;;  %v1042_v0 = vld [vmem:[%s1677_s8 + $0x18] sm:$0xff]  ;;  %v1041_v2 = vld [vmem:[%s1677_s8 + $0x10] sm:$0xff]  ;;  %p1014_p7 = scmp.ne.s32.totalorder %s1840_s1, 3 }
  0x6e   : > { %v1051_v59 = vld [vmem:[%s1677_s8 + $0x60] sm:$0xff]  ;;  %v1050_v1 = vld [vmem:[%s1677_s8 + $0x58] sm:$0xff]  ;;  %v1049_v3 = vld [vmem:[%s1677_s8 + $0x50] sm:$0xff] }
  0x6f   : > { %v408_v62 = vpack.c.b16 %v406_v60, %v406_v60  ;;  %v409_v63 = vpack.c.b16 %v407_v61, %v407_v61  ;;  %v1040_v4 = vld [vmem:[%s1677_s8 + $0x8] sm:$0xff]  ;;  %v1039_v6 = vld [vmem:[%s1677_s8] sm:$0xff]  ;;  %v1178_v8 = vld [vmem:[%s319_s30] ss:$0 sm:$0xff] }
  0x70   : > { %669 = vmatpush.bf16.xpose.msra.mxu2 %v1045_v41  ;;  %v1048_v5 = vld [vmem:[%s1677_s8 + $0x48] sm:$0xff]  ;;  %v1047_v7 = vld [vmem:[%s1677_s8 + $0x40] sm:$0xff] }
  0x71   : > { %682 = vmatpush.bf16.xpose.msra.mxu3 %v1053_v42  ;;  %v537_v29 = vld [vmem:[#allocation2] sm:$0xff]  ;;  %v538_v30 = vld [vmem:[#allocation2 + $0x8] sm:$0xff] }
  0x73   : > { %494 = vmatpush.bf16.xpose.msra.mxu0 %v928_v19 }
  0x74   : > { %507 = vmatpush.bf16.xpose.msra.mxu1 %v932_v20 }
  0x78   : > { %670 = vmatpush.bf16.xpose.msra.mxu2 %v1044_v49 }
  0x79   : > { %683 = vmatpush.bf16.xpose.msra.mxu3 %v1052_v50 }
  0x7b   : > { %495 = vmatpush.bf16.xpose.msra.mxu0 %v920_v25 }
  0x7c   : > { %508 = vmatpush.bf16.xpose.msra.mxu1 %v924_v26 }
  0x80   : > { %671 = vmatpush.bf16.xpose.msra.mxu2 %v1043_v58 }
  0x81   : > { %684 = vmatpush.bf16.xpose.msra.mxu3 %v1051_v59 }
  0x83   : > { %496 = vmatpush.bf16.xpose.msra.mxu0 %v912_v31 }
  0x84   : > { %509 = vmatpush.bf16.xpose.msra.mxu1 %v916_v32 }
  0x88   : > { %672 = vmatpush.bf16.xpose.msra.mxu2 %v1042_v0 }
  0x89   : > { %685 = vmatpush.bf16.xpose.msra.mxu3 %v1050_v1 }
  0x8b   : > { %497 = vmatpush.bf16.xpose.msra.mxu0 %v904_v39 }
  0x8c   : > { %510 = vmatpush.bf16.xpose.msra.mxu1 %v908_v40 }
  0x90   : > { %673 = vmatpush.bf16.xpose.msra.mxu2 %v1041_v2 }
  0x91   : > { %686 = vmatpush.bf16.xpose.msra.mxu3 %v1049_v3 }
  0x93   : > { %498 = vmatpush.bf16.xpose.msra.mxu0 %v896_v47 }
  0x94   : > { %511 = vmatpush.bf16.xpose.msra.mxu1 %v900_v48 }
  0x98   : > { %674 = vmatpush.bf16.xpose.msra.mxu2 %v1040_v4 }
  0x99   : > { %687 = vmatpush.bf16.xpose.msra.mxu3 %v1048_v5 }
  0x9b   : > { %499 = vmatpush.bf16.xpose.msra.mxu0 %v888_v55 }
  0x9c   : > { %512 = vmatpush.bf16.xpose.msra.mxu1 %v892_v57 }
  0xa0   : > { %675 = vmatpush.bf16.xpose.msra.mxu2 %v1039_v6 }
  0xa1   : > { %688 = vmatpush.bf16.xpose.msra.mxu3 %v1047_v7 }
  0xa2   : > { %500 = vmatmul.bf16.vlgmr.msra.gmra.mxu0 %v408_v62 }
  0xa3   : > { %513 = vmatmul.bf16.vlgmr.msra.gmra.mxu1 %v409_v63 }
 0x11f   : > { %v501_v9 = vpop.f32.mrf.mxu0 }
 0x120   : > { %v502_v10 = vadd.f32 %v1178_v8, %v501_v9  ;;  %v514_v11 = vpop.f32.mrf.mxu1 }
 0x122   : > { %v515_v12 = vadd.f32 %v514_v11, %v502_v10 }
 0x124   : > { %v949_v13 = vmul.f32 -1.442695, %v515_v12 }
 0x126   : > { %1179 = vpow2.f32 %v949_v13 }
 0x127   : > { %v503_v14 = vpop.f32.mrf.mxu0 }
 0x128   : > { %v516_v15 = vpop.f32.mrf.mxu1 }
 0x12c   : > { %v1180_v16 = vpop.eup %1179 }
 0x12d   : > { %v521_v17 = vadd.f32 1.0, %v1180_v16 }
 0x12f   : > { %1181 = vrcp.f32 %v521_v17  ;;  %v533_v21 = vand.u32 2147483648, %v521_v17  ;;  %v531_v23 = vand.u32 2147483647, %v521_v17  ;;  %vm527_vm1 = vweird.f32 %v521_v17 }
 0x131   : > { %v534_v25 = vor.u32 1.1754944e-38, %v533_v21  ;;  %vm532_vm3 = vcmp.eq.f32.partialorder %v531_v23, 8.507059e+37 }
 0x135   : > { %v1182_v18 = vpop.eup %1181 }
 0x136   : > { %v523_v19 = vmul.f32 %v1182_v18, %v521_v17  ;;  %vm528_vm0 = vweird.f32 %v1182_v18 }
 0x137   : > { %vm529_vm2 = vmor %vm527_vm1, %vm528_vm0 }
 0x138   : > { %v524_v20 = vsub.f32 1.0, %v523_v19 }
 0x13a   : > { %v525_v22 = vmul.f32 %v1182_v18, %v524_v20 }
 0x13c   : > { %v526_v24 = vadd.f32 %v1182_v18, %v525_v22 }
 0x13e   : > { %v530_v26 = vsel %vm529_vm2, %v1182_v18, %v526_v24 }
 0x13f   : > { %v535_v27 = vsel %vm532_vm3, %v534_v25, %v530_v26 }
 0x140   : > { %v539_v28 = vpack.c.bf16 %v535_v27, %v535_v27 }
 0x142   : > { %676 = vmatmul.bf16.vlgmr.msra.gmra.mxu2 %v539_v28  ;;  %689 = vmatmul.bf16.vlgmr.msra.gmra.mxu3 %v539_v28 }
 0x1c5   : > { %v677_v31 = vpop.f32.mrf.mxu2  ;;  %v690_v32 = vpop.f32.mrf.mxu3 }
 0x1c6   : > { %v694_v33 = vadd.f32 %v677_v31, %v537_v29  ;;  %v695_v34 = vadd.f32 %v690_v32, %v538_v30 }
 0x1c8   : > { %696 = vst [vmem:[#allocation2] sm:$0xff] %v694_v33 }
 0x1c9   : > { %697 = vst [vmem:[#allocation2 + $0x8] sm:$0xff] %v695_v34  ;;  %701 = sbr.rel (%p1014_p7) target bundleno = 466 (0x1d2), region = 64 }
 0x1cd   : > { %v679_v35 = vpop.f32.mrf.mxu2  ;;  %v692_v36 = vpop.f32.mrf.mxu3 }
 0x1cf   : > { %v702_v37 = vld [vmem:[#allocation2] sm:$0xff] }
 0x1d0   : > { %v703_v38 = vld [vmem:[#allocation2 + $0x8] sm:$0xff]  ;;  %704 = vst [vmem:[%s1684_s24] sm:$0xff] %v702_v37 }
 0x1d1   : > { %705 = vst [vmem:[%s1684_s24 + $0x8] sm:$0xff] %v703_v38 }
 0x1d2 PF: > { %s1841_s17 = sld [smem:[#allocation19_spill]]  ;;  %s720_s29 = sshll.u32 %s1684_s24, 4  ;;  %s721_s29 = int_to_ptr.vmem [resolvable:$true] %s720_s29 }
 0x1d3   : > { %s1842_s20 = sld [smem:[#allocation30_spill]]  ;;  %s707_s2 = scalar_lea.sflag [#allocation5], %s1654_s5 }
 0x1d8   : > { %s1055_s14 = sshll.u32 %s1841_s17, 4 }
 0x1d9   : > { %s1843_s16 = smov %s1842_s20  ;;  %s718_s7 = scalar_lea.hbm %s1842_s20, %s1055_s14 }
 0x1da   : > { %s722_s0 = sshll.u32 %s718_s7, 4  ;;  %s1323_s9 = scalar_lea.hbm %s1843_s16, 32  ;;  %s723_s0 = int_to_ptr.hbm [resolvable:$true] %s722_s0 }
 0x1db   : > { %s1317_s6 = sshra.s32 %s723_s0, 4  ;;  %s1318_s6 = int_to_ptr.hbm [resolvable:$true] %s1317_s6 }
 0x1dc   : > { %s1319_s15 = scalar_lea.hbm %s1318_s6, 16  ;;  %p1324_p3 = scmp.lt.s32.totalorder %s1318_s6, %s1843_s16 }
 0x1dd   : > { %p1320_p10 = scmp.ne.s32.totalorder %s1318_s6, %s1319_s15  ;;  %p1325_p0 = scmp.lt.s32.totalorder %s1323_s9, %s1319_s15 }
 0x1df   : > { %p1321_p11 = pnand %p1320_p10, %p1615_p12  ;;  %p1326_p5 = por %p1325_p0, %p1324_p3 }
 0x1e1   : > { %p1322_p1 = pneg %p1321_p11 }
 0x1e3   : > { %p1327_p6 = pnand %p1326_p5, %p1322_p1 }
 0x1e5   : > { %1330 = shalt.err (!%p1327_p6)
}
 0x1e6   : > { %1064 = dma.vmem_to_hbm [thread:$0]  (%p1615_p12), %s721_s29, 256, %s723_s0, %s707_s2  }
 0x1e7 PF: > { %p1084_p8 = scmp.ge.s32.totalorder %s1433_s28, 2  ;;  %s734_s24 = sand.u32 1, %s1405_s21  }
 0x1e8   : > { %s735_s13 = scalar_lea.sflag [#allocation5], %s734_s24 }
 0x1e9   : > { %p1080_p9 = pnand %p1084_p8, %p1624_p13 }
 0x1eb   : > { %p1081_p2 = pneg %p1080_p9 }
 0x1ed   : > { %1388 = dma.done.wait (%p1081_p2), %s735_s13, 256  }
 0x1ee   : > { %1390 = vsyncadd (%p1081_p2), %s735_s13, 4294967040  ;;  %s27_s28 = sadd.s32 1, %s1433_s28   ;;  %s1845_s12 = sld [smem:[#allocation16_spill]] }
 0x1ef   : > { %p24_p4 = scmp.ge.s32.totalorder %s27_s28, 10   ;;  %s1846_s20 = sld [smem:[#allocation23_spill]] }
 0x1f0   : > { %s1847_s25 = sld [smem:[#allocation17_spill]]  ;;  %s1852_s18 = smov %s1397_s19 }
 0x1f1   : > { %s1848_s23 = sld [smem:[#allocation24_spill]]  ;;  %s1854_s21 = smov %s1409_s22 }
 0x1f2   : > { %s1849_s4 = sld [smem:[#allocation20_spill]]  ;;  %s1856_s24 = smov %s1425_s26 }
 0x1f3   : > { %s1850_s1 = sld [smem:[#allocation21_spill]] }
 0x1f4   : > { %s1851_s27 = sld [smem:[#allocation22_spill]]  ;;  %s1853_s19 = smov %s1845_s12 }
 0x1f5   :  { %26 = sbr.rel (!%p24_p4) target bundleno = 19 (0x13), region = 130 }
 0x1f6   : > { %s1855_s22 = smov %s1847_s25 }
 0x1f8   : > { %s1857_s25 = smov %s1849_s4 }
 0x1f9   : > { %s1858_s26 = smov %s1850_s1 }
 0x1fa   :  { %741 = vsyncpa [#allocation4], 1 }
 0x1fb   :  { %743 = vsyncpa [#allocation4 + $0x1], 1 }
 0x1fc   :  { %744 = vsyncpa [#allocation7], 1 }
 0x1fd   :  { %746 = vsyncpa [#allocation7 + $0x1], 1 }
 0x1fe   :  { %747 = vsyncpa [#allocation10], 1 }
 0x1ff   :  { %749 = vsyncpa [#allocation10 + $0x1], 1 }
 0x200   :  { %750 = vsyncpa [#allocation5], 1 }
 0x201   :  { %752 = vsyncpa [#allocation5 + $0x1], 1 }

</bundles_post_ra>
